<compile_context>
chip_gen: v6e
topology: v6e:2x2x1
jax: 0.10.0
libtpu: 0.0.40
codegen_flags: <defaults>
</compile_context>

<pallas_src>
import jax
import jax.numpy as jnp
from jax import lax
from jax.experimental import pallas as pl
from jax.experimental.pallas import tpu as pltpu

# ----------------------------- config ---------------------------------------
N_EMBD = 32                    # C
N_HEAD = 4                     # H
HEAD_SIZE = N_EMBD // N_HEAD   # D
BLOCK_SIZE = 8                 # max sequence length
LN_EPS = 1e-5                  # PyTorch nn.LayerNorm default


def _layer_norm(v, g, b):
    mu = jnp.mean(v, axis=-1, keepdims=True)
    var = jnp.mean((v - mu) * (v - mu), axis=-1, keepdims=True)
    return (v - mu) * lax.rsqrt(var + LN_EPS) * g + b


# ----------------------------- kernel ---------------------------------------
def transformer_block_kernel(
    x_ref,                       # (BBLK, T, C) f32
    vecs_ref,                    # (6, C) f32: [ln1g, ln1b, bo, ln2g, ln2b, b2]
    wqkv_ref,                    # (C, 3C) bf16  [Wq*D^-0.5 | Wk | Wv]
    wo_ref,                      # (C, C)  bf16
    w1_ref,                      # (C, 4C) bf16
    b1_ref,                      # (1, 4C) f32
    w2_ref,                      # (4C, C) bf16
    out_ref,                     # (BBLK, T, C) f32
):
    BBLK, T, C = x_ref.shape
    H = N_HEAD
    D = C // H
    R = BBLK * T

    # Flatten batch*seq (leading-dim merge: layout no-op).
    x = x_ref[...].reshape(R, C)

    ln1g, ln1b = vecs_ref[0], vecs_ref[1]
    bo = vecs_ref[2]
    ln2g, ln2b = vecs_ref[3], vecs_ref[4]
    b2 = vecs_ref[5]

    # ---- LN1 + fused QKV projection on the whole slab (one tall MXU matmul).
    # Softmax scale is pre-folded into the Q columns of Wqkv.
    h1 = _layer_norm(x, ln1g, ln1b)
    qkv = jnp.dot(h1.astype(jnp.bfloat16), wqkv_ref[...],
                  preferred_element_type=jnp.float32)          # (R, 3C) f32
    qkv_b = qkv.astype(jnp.bfloat16)                           # bf16 MXU operands

    # ---- multi-head causal self-attention, batched over BBLK sequences ----
    row = lax.broadcasted_iota(jnp.int32, (T, T), 0)
    col = lax.broadcasted_iota(jnp.int32, (T, T), 1)
    causal = (col <= row)[None]                                 # (1, T, T)

    head_outs = []
    for h in range(H):                                          # static unroll (H=4)
        q_h = qkv_b[:, h * D:(h + 1) * D].reshape(BBLK, T, D)
        k_h = qkv_b[:, C + h * D:C + (h + 1) * D].reshape(BBLK, T, D)
        v_h = qkv_b[:, 2 * C + h * D:2 * C + (h + 1) * D].reshape(BBLK, T, D)

        s = jnp.einsum('btd,bsd->bts', q_h, k_h,
                       preferred_element_type=jnp.float32)      # f32 scores
        s = jnp.where(causal, s, -jnp.inf)
        m = jnp.max(s, axis=-1, keepdims=True)
        e = jnp.exp(s - m)
        denom = jnp.sum(e, axis=-1, keepdims=True)
        p = (e * pl.reciprocal(denom, approx=True)).astype(jnp.bfloat16)  # EUP
        # TODO(synk): attention-weight dropout omitted (inference mode / p=0).

        o_h = jnp.einsum('bts,bsd->btd', p, v_h,
                         preferred_element_type=jnp.float32)    # (BBLK, T, D) f32
        head_outs.append(o_h.reshape(R, D))

    # Lane-concat all heads -> ONE (R,C)@(C,C) output projection.
    o_cat = jnp.concatenate(head_outs, axis=-1)                 # (R, C) f32
    sa = jnp.dot(o_cat.astype(jnp.bfloat16), wo_ref[...],
                 preferred_element_type=jnp.float32) + bo
    # TODO(synk): projection / FFN dropout omitted (inference mode / p=0).

    x1 = x + sa                                                 # residual 1

    # ---- LN2 + FFN on the slab ----
    h2 = _layer_norm(x1, ln2g, ln2b)
    ff = jnp.dot(h2.astype(jnp.bfloat16), w1_ref[...],
                 preferred_element_type=jnp.float32) + b1_ref[0]
    ff = jnp.maximum(ff, 0.0)                                   # ReLU
    ff = jnp.dot(ff.astype(jnp.bfloat16), w2_ref[...],
                 preferred_element_type=jnp.float32) + b2

    out_ref[...] = (x1 + ff).reshape(BBLK, T, C)                # residual 2


# ----------------------------- wrapper ---------------------------------------
def transformer_block(x, params, *, bblk=None):
    (ln1g, ln1b, wq, wk, wv, wo, bo, ln2g, ln2b, w1, b1, w2, b2) = params
    B, T, C = x.shape
    H, D = N_HEAD, HEAD_SIZE
    assert C == N_EMBD and T <= BLOCK_SIZE

    if bblk is None:
        # Tall MXU LHS: target R = bblk*T ~= 512 rows per grid step, but keep
        # >= 2 grid steps when B allows (v7x dual-TC sharding + pipelining).
        # The f32 intermediates (~R*12C floats) stay tiny vs scoped VMEM at
        # this size, so no per-generation cap is needed here.
        bblk = max(1, min(B, 512 // T))
        if B >= 2:
            bblk = min(bblk, max(1, B // 2))
        while B % bblk:                                         # must divide B
            bblk -= 1
    assert B % bblk == 0
    grid = (B // bblk,)

    # Weight prep in the wrapper (pure XLA, no in-kernel relayout):
    #  * fold the 1/sqrt(D) softmax scale into Wq,
    #  * fuse Q/K/V into a single (C, 3C) weight -> one QKV matmul,
    #  * cast all MXU weights to bf16 (halved weight DMA, native MXU rate),
    #  * pack the six (1, C) f32 vectors into one (6, C) block (one DMA).
    wqkv = jnp.concatenate([wq * (D ** -0.5), wk, wv], axis=1).astype(jnp.bfloat16)
    wo_b = wo.astype(jnp.bfloat16)
    w1_b = w1.astype(jnp.bfloat16)
    w2_b = w2.astype(jnp.bfloat16)
    vecs = jnp.concatenate([ln1g, ln1b, bo, ln2g, ln2b, b2], axis=0)  # (6, C)

    rep2 = lambda shape: pl.BlockSpec(shape, lambda i: (0, 0))

    in_specs = [
        pl.BlockSpec((bblk, T, C), lambda i: (i, 0, 0)),        # x
        rep2((6, C)),                                           # packed vectors
        rep2((C, 3 * C)),                                       # Wqkv
        rep2((C, C)),                                           # Wo
        rep2((C, 4 * C)),                                       # W1
        rep2((1, 4 * C)),                                       # b1
        rep2((4 * C, C)),                                       # W2
    ]

    return pl.pallas_call(
        transformer_block_kernel,
        out_shape=jax.ShapeDtypeStruct((B, T, C), x.dtype),
        grid=grid,
        in_specs=in_specs,
        out_specs=pl.BlockSpec((bblk, T, C), lambda i: (i, 0, 0)),
        compiler_params=pltpu.CompilerParams(
            dimension_semantics=("parallel",),                  # megacore / dual-TC
            vmem_limit_bytes=32 * 1024 * 1024,                  # raise v5e's 16 MiB default
        ),
    )(x, vecs, wqkv, wo_b, w1_b, b1, w2_b)


# ----------------------------- pure-JAX reference ----------------------------
def reference_block(x, params):
    (ln1g, ln1b, wq, wk, wv, wo, bo, ln2g, ln2b, w1, b1, w2, b2) = params
    B, T, C = x.shape
    H, D = N_HEAD, HEAD_SIZE

    def ln(v, g, b):
        mu = jnp.mean(v, axis=-1, keepdims=True)
        var = jnp.mean((v - mu) ** 2, axis=-1, keepdims=True)
        return (v - mu) / jnp.sqrt(var + LN_EPS) * g[0] + b[0]

    h1 = ln(x, ln1g, ln1b)
    q = h1 @ wq
    k = h1 @ wk
    v = h1 @ wv
    qh = q.reshape(B, T, H, D).transpose(0, 2, 1, 3)
    kh = k.reshape(B, T, H, D).transpose(0, 2, 1, 3)
    vh = v.reshape(B, T, H, D).transpose(0, 2, 1, 3)
    s = jnp.einsum("bhtd,bhsd->bhts", qh, kh) * D ** (-0.5)
    mask = jnp.tril(jnp.ones((T, T), bool))
    s = jnp.where(mask, s, -jnp.inf)
    p = jax.nn.softmax(s, axis=-1)
    attn = jnp.einsum("bhts,bhsd->bhtd", p, vh)
    attn = attn.transpose(0, 2, 1, 3).reshape(B, T, C)
    x1 = x + (attn @ wo + bo[0])
    h2 = ln(x1, ln2g, ln2b)
    ff = jnp.maximum(h2 @ w1 + b1[0], 0.0) @ w2 + b2[0]
    return x1 + ff


# ----------------------------- param init ------------------------------------
def init_params(key):
    C = N_EMBD
    ks = jax.random.split(key, 8)
    scale = 0.02
    ln1g = jnp.ones((1, C), jnp.float32)
    ln1b = jnp.zeros((1, C), jnp.float32)
    wq = scale * jax.random.normal(ks[0], (C, C), jnp.float32)
    wk = scale * jax.random.normal(ks[1], (C, C), jnp.float32)
    wv = scale * jax.random.normal(ks[2], (C, C), jnp.float32)
    wo = scale * jax.random.normal(ks[3], (C, C), jnp.float32)
    bo = scale * jax.random.normal(ks[4], (1, C), jnp.float32)
    ln2g = jnp.ones((1, C), jnp.float32)
    ln2b = jnp.zeros((1, C), jnp.float32)
    w1 = scale * jax.random.normal(ks[5], (C, 4 * C), jnp.float32)
    b1 = jnp.zeros((1, 4 * C), jnp.float32)
    w2 = scale * jax.random.normal(ks[6], (4 * C, C), jnp.float32)
    b2 = jnp.zeros((1, C), jnp.float32)
    return (ln1g, ln1b, wq, wk, wv, wo, bo, ln2g, ln2b, w1, b1, w2, b2)


# ----------------------------- main -------------------------------------------
if __name__ == "__main__":
    key = jax.random.PRNGKey(0)
    k_x, k_p = jax.random.split(key)

    B, T = 2, BLOCK_SIZE
    x = jax.random.normal(k_x, (B, T, N_EMBD), jnp.float32)
    params = init_params(k_p)

    out = jax.block_until_ready(transformer_block(x, params))
    ref = reference_block(x, params)

    assert out.shape == (B, T, N_EMBD)
    # bf16 MXU operands + approx softmax reciprocal vs f32 reference.
    err = jnp.max(jnp.abs(out - ref))
    assert jnp.allclose(out, ref, atol=2e-2, rtol=2e-2), f"mismatch, max|diff|={err}"

    print("KERNEL_OK")
</pallas_src>

<mosaic_0001>
module attributes {stable_mosaic.version = 11 : i64} {
  func.func @transformer_block_kernel(%arg0: i32, %arg1: memref<1x8x32xf32, #tpu.memory_space<vmem>>, %arg2: memref<6x32xf32, #tpu.memory_space<vmem>>, %arg3: memref<32x96xbf16, #tpu.memory_space<vmem>>, %arg4: memref<32x32xbf16, #tpu.memory_space<vmem>>, %arg5: memref<32x128xbf16, #tpu.memory_space<vmem>>, %arg6: memref<1x128xf32, #tpu.memory_space<vmem>>, %arg7: memref<128x32xbf16, #tpu.memory_space<vmem>>, %arg8: memref<1x8x32xf32, #tpu.memory_space<vmem>>) attributes {dimension_semantics = [#tpu.dimension_semantics<parallel>], iteration_bounds = array<i64: 2>, scalar_prefetch = 0 : i64, scratch_operands = 0 : i64, tpu.core_type = #tpu.core_type<tc>, window_params = [{transform_indices = @transform_0, window_bounds = array<i64: 1, 8, 32>}, {pipeline_mode = #tpu.pipeline_mode<synchronous>, transform_indices = @transform_1, window_bounds = array<i64: 6, 32>}, {pipeline_mode = #tpu.pipeline_mode<synchronous>, transform_indices = @transform_2, window_bounds = array<i64: 32, 96>}, {pipeline_mode = #tpu.pipeline_mode<synchronous>, transform_indices = @transform_3, window_bounds = array<i64: 32, 32>}, {pipeline_mode = #tpu.pipeline_mode<synchronous>, transform_indices = @transform_4, window_bounds = array<i64: 32, 128>}, {pipeline_mode = #tpu.pipeline_mode<synchronous>, transform_indices = @transform_5, window_bounds = array<i64: 1, 128>}, {pipeline_mode = #tpu.pipeline_mode<synchronous>, transform_indices = @transform_6, window_bounds = array<i64: 128, 32>}, {transform_indices = @transform_7, window_bounds = array<i64: 1, 8, 32>}]} {
    %c0 = arith.constant 0 : index
    %c0_0 = arith.constant 0 : index
    %c0_1 = arith.constant 0 : index
    %0 = vector.load %arg1[%c0, %c0_0, %c0_1] : memref<1x8x32xf32, #tpu.memory_space<vmem>>, vector<1x8x32xf32>
    %1 = vector.shape_cast %0 : vector<1x8x32xf32> to vector<8x32xf32>
    %c0_2 = arith.constant 0 : index
    %c0_3 = arith.constant 0 : index
    %2 = vector.load %arg2[%c0_2, %c0_3] : memref<6x32xf32, #tpu.memory_space<vmem>>, vector<1x32xf32>
    %3 = vector.shape_cast %2 : vector<1x32xf32> to vector<32xf32>
    %c1 = arith.constant 1 : index
    %c0_4 = arith.constant 0 : index
    %4 = vector.load %arg2[%c1, %c0_4] : memref<6x32xf32, #tpu.memory_space<vmem>>, vector<1x32xf32>
    %5 = vector.shape_cast %4 : vector<1x32xf32> to vector<32xf32>
    %c2 = arith.constant 2 : index
    %c0_5 = arith.constant 0 : index
    %6 = vector.load %arg2[%c2, %c0_5] : memref<6x32xf32, #tpu.memory_space<vmem>>, vector<1x32xf32>
    %7 = vector.shape_cast %6 : vector<1x32xf32> to vector<32xf32>
    %c3 = arith.constant 3 : index
    %c0_6 = arith.constant 0 : index
    %8 = vector.load %arg2[%c3, %c0_6] : memref<6x32xf32, #tpu.memory_space<vmem>>, vector<1x32xf32>
    %9 = vector.shape_cast %8 : vector<1x32xf32> to vector<32xf32>
    %c4 = arith.constant 4 : index
    %c0_7 = arith.constant 0 : index
    %10 = vector.load %arg2[%c4, %c0_7] : memref<6x32xf32, #tpu.memory_space<vmem>>, vector<1x32xf32>
    %11 = vector.shape_cast %10 : vector<1x32xf32> to vector<32xf32>
    %c5 = arith.constant 5 : index
    %c0_8 = arith.constant 0 : index
    %12 = vector.load %arg2[%c5, %c0_8] : memref<6x32xf32, #tpu.memory_space<vmem>>, vector<1x32xf32>
    %13 = vector.shape_cast %12 : vector<1x32xf32> to vector<32xf32>
    %cst = arith.constant dense<0.000000e+00> : vector<8xf32>
    %14 = vector.multi_reduction <add>, %1, %cst [1] : vector<8x32xf32> to vector<8xf32>
    %15 = vector.shape_cast %14 : vector<8xf32> to vector<8x1xf32>
    %cst_9 = arith.constant 3.200000e+01 : f32
    %16 = vector.broadcast %cst_9 : f32 to vector<8x1xf32>
    %17 = arith.divf %15, %16 : vector<8x1xf32>
    %18 = vector.broadcast %17 : vector<8x1xf32> to vector<8x32xf32>
    %19 = arith.subf %1, %18 : vector<8x32xf32>
    %20 = vector.broadcast %17 : vector<8x1xf32> to vector<8x32xf32>
    %21 = arith.subf %1, %20 : vector<8x32xf32>
    %22 = arith.mulf %19, %21 : vector<8x32xf32>
    %cst_10 = arith.constant dense<0.000000e+00> : vector<8xf32>
    %23 = vector.multi_reduction <add>, %22, %cst_10 [1] : vector<8x32xf32> to vector<8xf32>
    %24 = vector.shape_cast %23 : vector<8xf32> to vector<8x1xf32>
    %cst_11 = arith.constant 3.200000e+01 : f32
    %25 = vector.broadcast %cst_11 : f32 to vector<8x1xf32>
    %26 = arith.divf %24, %25 : vector<8x1xf32>
    %27 = vector.broadcast %17 : vector<8x1xf32> to vector<8x32xf32>
    %28 = arith.subf %1, %27 : vector<8x32xf32>
    %cst_12 = arith.constant 9.99999974E-6 : f32
    %29 = vector.broadcast %cst_12 : f32 to vector<8x1xf32>
    %30 = arith.addf %26, %29 : vector<8x1xf32>
    %31 = math.rsqrt %30 : vector<8x1xf32>
    %32 = vector.broadcast %31 : vector<8x1xf32> to vector<8x32xf32>
    %33 = arith.mulf %28, %32 : vector<8x32xf32>
    %34 = vector.shape_cast %3 : vector<32xf32> to vector<1x32xf32>
    %35 = vector.broadcast %34 : vector<1x32xf32> to vector<8x32xf32>
    %36 = arith.mulf %33, %35 : vector<8x32xf32>
    %37 = vector.shape_cast %5 : vector<32xf32> to vector<1x32xf32>
    %38 = vector.broadcast %37 : vector<1x32xf32> to vector<8x32xf32>
    %39 = arith.addf %36, %38 : vector<8x32xf32>
    %40 = arith.truncf %39 : vector<8x32xf32> to vector<8x32xbf16>
    %c0_13 = arith.constant 0 : index
    %c0_14 = arith.constant 0 : index
    %41 = vector.load %arg3[%c0_13, %c0_14] : memref<32x96xbf16, #tpu.memory_space<vmem>>, vector<32x96xbf16>
    %cst_15 = arith.constant dense<0.000000e+00> : vector<8x96xf32>
    %42 = tpu.matmul %40, %41, %cst_15 {dimension_numbers = #tpu.dot_dimension_numbers<[1], [0], [0], [1], [0, 0, 1, 1], [], []>} : vector<8x32xbf16>, vector<32x96xbf16>, vector<8x96xf32> -> vector<8x96xf32>
    %43 = arith.truncf %42 : vector<8x96xf32> to vector<8x96xbf16>
    %44 = tpu.iota {dimensions = array<i32: 0>} : vector<8x8xi32>
    %45 = tpu.iota {dimensions = array<i32: 1>} : vector<8x8xi32>
    %46 = arith.cmpi sle, %45, %44 : vector<8x8xi32>
    %47 = vector.shape_cast %46 : vector<8x8xi1> to vector<1x8x8xi1>
    %48 = vector.extract_strided_slice %43 {offsets = [0, 0], sizes = [8, 8], strides = [1, 1]} : vector<8x96xbf16> to vector<8x8xbf16>
    %49 = vector.shape_cast %48 : vector<8x8xbf16> to vector<1x8x8xbf16>
    %50 = vector.extract_strided_slice %43 {offsets = [0, 32], sizes = [8, 8], strides = [1, 1]} : vector<8x96xbf16> to vector<8x8xbf16>
    %51 = vector.shape_cast %50 : vector<8x8xbf16> to vector<1x8x8xbf16>
    %52 = vector.extract_strided_slice %43 {offsets = [0, 64], sizes = [8, 8], strides = [1, 1]} : vector<8x96xbf16> to vector<8x8xbf16>
    %53 = vector.shape_cast %52 : vector<8x8xbf16> to vector<1x8x8xbf16>
    "tpu.trace_start"() <{level = 10 : i32, message = "btd,bsd->bts"}> : () -> ()
    %cst_16 = arith.constant dense<0.000000e+00> : vector<1x8x8xf32>
    %54 = tpu.matmul %49, %51, %cst_16 {dimension_numbers = #tpu.dot_dimension_numbers<[2], [2], [1], [1], [0, 0, 0, 1, 1, 1], [0], [0]>} : vector<1x8x8xbf16>, vector<1x8x8xbf16>, vector<1x8x8xf32> -> vector<1x8x8xf32>
    %cst_17 = arith.constant 0xFF800000 : f32
    "tpu.trace_stop"() : () -> ()
    %55 = vector.broadcast %cst_17 : f32 to vector<1x8x8xf32>
    %56 = arith.select %47, %54, %55 : vector<1x8x8xi1>, vector<1x8x8xf32>
    %cst_18 = arith.constant dense<0xFF800000> : vector<1x8xf32>
    %57 = vector.multi_reduction <maximumf>, %56, %cst_18 [2] : vector<1x8x8xf32> to vector<1x8xf32>
    %58 = vector.shape_cast %57 : vector<1x8xf32> to vector<1x8x1xf32>
    %59 = vector.broadcast %58 : vector<1x8x1xf32> to vector<1x8x8xf32>
    %60 = arith.subf %56, %59 : vector<1x8x8xf32>
    %61 = math.exp %60 : vector<1x8x8xf32>
    %cst_19 = arith.constant dense<0.000000e+00> : vector<1x8xf32>
    %62 = vector.multi_reduction <add>, %61, %cst_19 [2] : vector<1x8x8xf32> to vector<1x8xf32>
    %63 = vector.shape_cast %62 : vector<1x8xf32> to vector<1x8x1xf32>
    %64 = tpu.reciprocal %63 {approx = true} : vector<1x8x1xf32> -> vector<1x8x1xf32>
    %65 = vector.broadcast %64 : vector<1x8x1xf32> to vector<1x8x8xf32>
    %66 = arith.mulf %61, %65 : vector<1x8x8xf32>
    %67 = arith.truncf %66 : vector<1x8x8xf32> to vector<1x8x8xbf16>
    "tpu.trace_start"() <{level = 10 : i32, message = "bts,bsd->btd"}> : () -> ()
    %cst_20 = arith.constant dense<0.000000e+00> : vector<1x8x8xf32>
    %68 = tpu.matmul %67, %53, %cst_20 {dimension_numbers = #tpu.dot_dimension_numbers<[2], [1], [1], [2], [0, 0, 0, 1, 1, 2], [0], [0]>} : vector<1x8x8xbf16>, vector<1x8x8xbf16>, vector<1x8x8xf32> -> vector<1x8x8xf32>
    "tpu.trace_stop"() : () -> ()
    %69 = vector.shape_cast %68 : vector<1x8x8xf32> to vector<8x8xf32>
    %70 = vector.extract_strided_slice %43 {offsets = [0, 8], sizes = [8, 8], strides = [1, 1]} : vector<8x96xbf16> to vector<8x8xbf16>
    %71 = vector.shape_cast %70 : vector<8x8xbf16> to vector<1x8x8xbf16>
    %72 = vector.extract_strided_slice %43 {offsets = [0, 40], sizes = [8, 8], strides = [1, 1]} : vector<8x96xbf16> to vector<8x8xbf16>
    %73 = vector.shape_cast %72 : vector<8x8xbf16> to vector<1x8x8xbf16>
    %74 = vector.extract_strided_slice %43 {offsets = [0, 72], sizes = [8, 8], strides = [1, 1]} : vector<8x96xbf16> to vector<8x8xbf16>
    %75 = vector.shape_cast %74 : vector<8x8xbf16> to vector<1x8x8xbf16>
    "tpu.trace_start"() <{level = 10 : i32, message = "btd,bsd->bts"}> : () -> ()
    %cst_21 = arith.constant dense<0.000000e+00> : vector<1x8x8xf32>
    %76 = tpu.matmul %71, %73, %cst_21 {dimension_numbers = #tpu.dot_dimension_numbers<[2], [2], [1], [1], [0, 0, 0, 1, 1, 1], [0], [0]>} : vector<1x8x8xbf16>, vector<1x8x8xbf16>, vector<1x8x8xf32> -> vector<1x8x8xf32>
    %cst_22 = arith.constant 0xFF800000 : f32
    "tpu.trace_stop"() : () -> ()
    %77 = vector.broadcast %cst_22 : f32 to vector<1x8x8xf32>
    %78 = arith.select %47, %76, %77 : vector<1x8x8xi1>, vector<1x8x8xf32>
    %cst_23 = arith.constant dense<0xFF800000> : vector<1x8xf32>
    %79 = vector.multi_reduction <maximumf>, %78, %cst_23 [2] : vector<1x8x8xf32> to vector<1x8xf32>
    %80 = vector.shape_cast %79 : vector<1x8xf32> to vector<1x8x1xf32>
    %81 = vector.broadcast %80 : vector<1x8x1xf32> to vector<1x8x8xf32>
    %82 = arith.subf %78, %81 : vector<1x8x8xf32>
    %83 = math.exp %82 : vector<1x8x8xf32>
    %cst_24 = arith.constant dense<0.000000e+00> : vector<1x8xf32>
    %84 = vector.multi_reduction <add>, %83, %cst_24 [2] : vector<1x8x8xf32> to vector<1x8xf32>
    %85 = vector.shape_cast %84 : vector<1x8xf32> to vector<1x8x1xf32>
    %86 = tpu.reciprocal %85 {approx = true} : vector<1x8x1xf32> -> vector<1x8x1xf32>
    %87 = vector.broadcast %86 : vector<1x8x1xf32> to vector<1x8x8xf32>
    %88 = arith.mulf %83, %87 : vector<1x8x8xf32>
    %89 = arith.truncf %88 : vector<1x8x8xf32> to vector<1x8x8xbf16>
    "tpu.trace_start"() <{level = 10 : i32, message = "bts,bsd->btd"}> : () -> ()
    %cst_25 = arith.constant dense<0.000000e+00> : vector<1x8x8xf32>
    %90 = tpu.matmul %89, %75, %cst_25 {dimension_numbers = #tpu.dot_dimension_numbers<[2], [1], [1], [2], [0, 0, 0, 1, 1, 2], [0], [0]>} : vector<1x8x8xbf16>, vector<1x8x8xbf16>, vector<1x8x8xf32> -> vector<1x8x8xf32>
    "tpu.trace_stop"() : () -> ()
    %91 = vector.shape_cast %90 : vector<1x8x8xf32> to vector<8x8xf32>
    %92 = vector.extract_strided_slice %43 {offsets = [0, 16], sizes = [8, 8], strides = [1, 1]} : vector<8x96xbf16> to vector<8x8xbf16>
    %93 = vector.shape_cast %92 : vector<8x8xbf16> to vector<1x8x8xbf16>
    %94 = vector.extract_strided_slice %43 {offsets = [0, 48], sizes = [8, 8], strides = [1, 1]} : vector<8x96xbf16> to vector<8x8xbf16>
    %95 = vector.shape_cast %94 : vector<8x8xbf16> to vector<1x8x8xbf16>
    %96 = vector.extract_strided_slice %43 {offsets = [0, 80], sizes = [8, 8], strides = [1, 1]} : vector<8x96xbf16> to vector<8x8xbf16>
    %97 = vector.shape_cast %96 : vector<8x8xbf16> to vector<1x8x8xbf16>
    "tpu.trace_start"() <{level = 10 : i32, message = "btd,bsd->bts"}> : () -> ()
    %cst_26 = arith.constant dense<0.000000e+00> : vector<1x8x8xf32>
    %98 = tpu.matmul %93, %95, %cst_26 {dimension_numbers = #tpu.dot_dimension_numbers<[2], [2], [1], [1], [0, 0, 0, 1, 1, 1], [0], [0]>} : vector<1x8x8xbf16>, vector<1x8x8xbf16>, vector<1x8x8xf32> -> vector<1x8x8xf32>
    %cst_27 = arith.constant 0xFF800000 : f32
    "tpu.trace_stop"() : () -> ()
    %99 = vector.broadcast %cst_27 : f32 to vector<1x8x8xf32>
    %100 = arith.select %47, %98, %99 : vector<1x8x8xi1>, vector<1x8x8xf32>
    %cst_28 = arith.constant dense<0xFF800000> : vector<1x8xf32>
    %101 = vector.multi_reduction <maximumf>, %100, %cst_28 [2] : vector<1x8x8xf32> to vector<1x8xf32>
    %102 = vector.shape_cast %101 : vector<1x8xf32> to vector<1x8x1xf32>
    %103 = vector.broadcast %102 : vector<1x8x1xf32> to vector<1x8x8xf32>
    %104 = arith.subf %100, %103 : vector<1x8x8xf32>
    %105 = math.exp %104 : vector<1x8x8xf32>
    %cst_29 = arith.constant dense<0.000000e+00> : vector<1x8xf32>
    %106 = vector.multi_reduction <add>, %105, %cst_29 [2] : vector<1x8x8xf32> to vector<1x8xf32>
    %107 = vector.shape_cast %106 : vector<1x8xf32> to vector<1x8x1xf32>
    %108 = tpu.reciprocal %107 {approx = true} : vector<1x8x1xf32> -> vector<1x8x1xf32>
    %109 = vector.broadcast %108 : vector<1x8x1xf32> to vector<1x8x8xf32>
    %110 = arith.mulf %105, %109 : vector<1x8x8xf32>
    %111 = arith.truncf %110 : vector<1x8x8xf32> to vector<1x8x8xbf16>
    "tpu.trace_start"() <{level = 10 : i32, message = "bts,bsd->btd"}> : () -> ()
    %cst_30 = arith.constant dense<0.000000e+00> : vector<1x8x8xf32>
    %112 = tpu.matmul %111, %97, %cst_30 {dimension_numbers = #tpu.dot_dimension_numbers<[2], [1], [1], [2], [0, 0, 0, 1, 1, 2], [0], [0]>} : vector<1x8x8xbf16>, vector<1x8x8xbf16>, vector<1x8x8xf32> -> vector<1x8x8xf32>
    "tpu.trace_stop"() : () -> ()
    %113 = vector.shape_cast %112 : vector<1x8x8xf32> to vector<8x8xf32>
    %114 = vector.extract_strided_slice %43 {offsets = [0, 24], sizes = [8, 8], strides = [1, 1]} : vector<8x96xbf16> to vector<8x8xbf16>
    %115 = vector.shape_cast %114 : vector<8x8xbf16> to vector<1x8x8xbf16>
    %116 = vector.extract_strided_slice %43 {offsets = [0, 56], sizes = [8, 8], strides = [1, 1]} : vector<8x96xbf16> to vector<8x8xbf16>
    %117 = vector.shape_cast %116 : vector<8x8xbf16> to vector<1x8x8xbf16>
    %118 = vector.extract_strided_slice %43 {offsets = [0, 88], sizes = [8, 8], strides = [1, 1]} : vector<8x96xbf16> to vector<8x8xbf16>
    %119 = vector.shape_cast %118 : vector<8x8xbf16> to vector<1x8x8xbf16>
    "tpu.trace_start"() <{level = 10 : i32, message = "btd,bsd->bts"}> : () -> ()
    %cst_31 = arith.constant dense<0.000000e+00> : vector<1x8x8xf32>
    %120 = tpu.matmul %115, %117, %cst_31 {dimension_numbers = #tpu.dot_dimension_numbers<[2], [2], [1], [1], [0, 0, 0, 1, 1, 1], [0], [0]>} : vector<1x8x8xbf16>, vector<1x8x8xbf16>, vector<1x8x8xf32> -> vector<1x8x8xf32>
    %cst_32 = arith.constant 0xFF800000 : f32
    "tpu.trace_stop"() : () -> ()
    %121 = vector.broadcast %cst_32 : f32 to vector<1x8x8xf32>
    %122 = arith.select %47, %120, %121 : vector<1x8x8xi1>, vector<1x8x8xf32>
    %cst_33 = arith.constant dense<0xFF800000> : vector<1x8xf32>
    %123 = vector.multi_reduction <maximumf>, %122, %cst_33 [2] : vector<1x8x8xf32> to vector<1x8xf32>
    %124 = vector.shape_cast %123 : vector<1x8xf32> to vector<1x8x1xf32>
    %125 = vector.broadcast %124 : vector<1x8x1xf32> to vector<1x8x8xf32>
    %126 = arith.subf %122, %125 : vector<1x8x8xf32>
    %127 = math.exp %126 : vector<1x8x8xf32>
    %cst_34 = arith.constant dense<0.000000e+00> : vector<1x8xf32>
    %128 = vector.multi_reduction <add>, %127, %cst_34 [2] : vector<1x8x8xf32> to vector<1x8xf32>
    %129 = vector.shape_cast %128 : vector<1x8xf32> to vector<1x8x1xf32>
    %130 = tpu.reciprocal %129 {approx = true} : vector<1x8x1xf32> -> vector<1x8x1xf32>
    %131 = vector.broadcast %130 : vector<1x8x1xf32> to vector<1x8x8xf32>
    %132 = arith.mulf %127, %131 : vector<1x8x8xf32>
    %133 = arith.truncf %132 : vector<1x8x8xf32> to vector<1x8x8xbf16>
    "tpu.trace_start"() <{level = 10 : i32, message = "bts,bsd->btd"}> : () -> ()
    %cst_35 = arith.constant dense<0.000000e+00> : vector<1x8x8xf32>
    %134 = tpu.matmul %133, %119, %cst_35 {dimension_numbers = #tpu.dot_dimension_numbers<[2], [1], [1], [2], [0, 0, 0, 1, 1, 2], [0], [0]>} : vector<1x8x8xbf16>, vector<1x8x8xbf16>, vector<1x8x8xf32> -> vector<1x8x8xf32>
    "tpu.trace_stop"() : () -> ()
    %135 = vector.shape_cast %134 : vector<1x8x8xf32> to vector<8x8xf32>
    %136 = tpu.concatenate %69, %91, %113, %135 in 1 : vector<8x8xf32>, vector<8x8xf32>, vector<8x8xf32>, vector<8x8xf32> -> vector<8x32xf32>
    %137 = arith.truncf %136 : vector<8x32xf32> to vector<8x32xbf16>
    %c0_36 = arith.constant 0 : index
    %c0_37 = arith.constant 0 : index
    %138 = vector.load %arg4[%c0_36, %c0_37] : memref<32x32xbf16, #tpu.memory_space<vmem>>, vector<32x32xbf16>
    %cst_38 = arith.constant dense<0.000000e+00> : vector<8x32xf32>
    %139 = tpu.matmul %137, %138, %cst_38 {dimension_numbers = #tpu.dot_dimension_numbers<[1], [0], [0], [1], [0, 0, 1, 1], [], []>} : vector<8x32xbf16>, vector<32x32xbf16>, vector<8x32xf32> -> vector<8x32xf32>
    %140 = vector.shape_cast %7 : vector<32xf32> to vector<1x32xf32>
    %141 = vector.broadcast %140 : vector<1x32xf32> to vector<8x32xf32>
    %142 = arith.addf %139, %141 : vector<8x32xf32>
    %143 = arith.addf %1, %142 : vector<8x32xf32>
    %cst_39 = arith.constant dense<0.000000e+00> : vector<8xf32>
    %144 = vector.multi_reduction <add>, %143, %cst_39 [1] : vector<8x32xf32> to vector<8xf32>
    %145 = vector.shape_cast %144 : vector<8xf32> to vector<8x1xf32>
    %cst_40 = arith.constant 3.200000e+01 : f32
    %146 = vector.broadcast %cst_40 : f32 to vector<8x1xf32>
    %147 = arith.divf %145, %146 : vector<8x1xf32>
    %148 = vector.broadcast %147 : vector<8x1xf32> to vector<8x32xf32>
    %149 = arith.subf %143, %148 : vector<8x32xf32>
    %150 = vector.broadcast %147 : vector<8x1xf32> to vector<8x32xf32>
    %151 = arith.subf %143, %150 : vector<8x32xf32>
    %152 = arith.mulf %149, %151 : vector<8x32xf32>
    %cst_41 = arith.constant dense<0.000000e+00> : vector<8xf32>
    %153 = vector.multi_reduction <add>, %152, %cst_41 [1] : vector<8x32xf32> to vector<8xf32>
    %154 = vector.shape_cast %153 : vector<8xf32> to vector<8x1xf32>
    %cst_42 = arith.constant 3.200000e+01 : f32
    %155 = vector.broadcast %cst_42 : f32 to vector<8x1xf32>
    %156 = arith.divf %154, %155 : vector<8x1xf32>
    %157 = vector.broadcast %147 : vector<8x1xf32> to vector<8x32xf32>
    %158 = arith.subf %143, %157 : vector<8x32xf32>
    %cst_43 = arith.constant 9.99999974E-6 : f32
    %159 = vector.broadcast %cst_43 : f32 to vector<8x1xf32>
    %160 = arith.addf %156, %159 : vector<8x1xf32>
    %161 = math.rsqrt %160 : vector<8x1xf32>
    %162 = vector.broadcast %161 : vector<8x1xf32> to vector<8x32xf32>
    %163 = arith.mulf %158, %162 : vector<8x32xf32>
    %164 = vector.shape_cast %9 : vector<32xf32> to vector<1x32xf32>
    %165 = vector.broadcast %164 : vector<1x32xf32> to vector<8x32xf32>
    %166 = arith.mulf %163, %165 : vector<8x32xf32>
    %167 = vector.shape_cast %11 : vector<32xf32> to vector<1x32xf32>
    %168 = vector.broadcast %167 : vector<1x32xf32> to vector<8x32xf32>
    %169 = arith.addf %166, %168 : vector<8x32xf32>
    %170 = arith.truncf %169 : vector<8x32xf32> to vector<8x32xbf16>
    %c0_44 = arith.constant 0 : index
    %c0_45 = arith.constant 0 : index
    %171 = vector.load %arg5[%c0_44, %c0_45] : memref<32x128xbf16, #tpu.memory_space<vmem>>, vector<32x128xbf16>
    %cst_46 = arith.constant dense<0.000000e+00> : vector<8x128xf32>
    %172 = tpu.matmul %170, %171, %cst_46 {dimension_numbers = #tpu.dot_dimension_numbers<[1], [0], [0], [1], [0, 0, 1, 1], [], []>} : vector<8x32xbf16>, vector<32x128xbf16>, vector<8x128xf32> -> vector<8x128xf32>
    %c0_47 = arith.constant 0 : index
    %c0_48 = arith.constant 0 : index
    %173 = vector.load %arg6[%c0_47, %c0_48] : memref<1x128xf32, #tpu.memory_space<vmem>>, vector<1x128xf32>
    %174 = vector.shape_cast %173 : vector<1x128xf32> to vector<128xf32>
    %175 = vector.shape_cast %174 : vector<128xf32> to vector<1x128xf32>
    %176 = vector.broadcast %175 : vector<1x128xf32> to vector<8x128xf32>
    %177 = arith.addf %172, %176 : vector<8x128xf32>
    %cst_49 = arith.constant 0.000000e+00 : f32
    %178 = vector.broadcast %cst_49 : f32 to vector<8x128xf32>
    %179 = arith.maximumf %177, %178 : vector<8x128xf32>
    %180 = arith.truncf %179 : vector<8x128xf32> to vector<8x128xbf16>
    %c0_50 = arith.constant 0 : index
    %c0_51 = arith.constant 0 : index
    %181 = vector.load %arg7[%c0_50, %c0_51] : memref<128x32xbf16, #tpu.memory_space<vmem>>, vector<128x32xbf16>
    %cst_52 = arith.constant dense<0.000000e+00> : vector<8x32xf32>
    %182 = tpu.matmul %180, %181, %cst_52 {dimension_numbers = #tpu.dot_dimension_numbers<[1], [0], [0], [1], [0, 0, 1, 1], [], []>} : vector<8x128xbf16>, vector<128x32xbf16>, vector<8x32xf32> -> vector<8x32xf32>
    %183 = vector.shape_cast %13 : vector<32xf32> to vector<1x32xf32>
    %184 = vector.broadcast %183 : vector<1x32xf32> to vector<8x32xf32>
    %185 = arith.addf %182, %184 : vector<8x32xf32>
    %186 = arith.addf %143, %185 : vector<8x32xf32>
    %187 = vector.shape_cast %186 : vector<8x32xf32> to vector<1x8x32xf32>
    %c0_53 = arith.constant 0 : index
    %c0_54 = arith.constant 0 : index
    %c0_55 = arith.constant 0 : index
    %188 = vector.load %arg8[%c0_53, %c0_54, %c0_55] : memref<1x8x32xf32, #tpu.memory_space<vmem>>, vector<1x8x32xf32>
    tpu.vector_store %arg8[%c0_53, %c0_54, %c0_55], %187 {strides = array<i32>} : memref<1x8x32xf32, #tpu.memory_space<vmem>>, vector<1x8x32xf32>,
    return
  }
  func.func @transform_0(%arg0: i32) -> (i32, i32, i32) {
    %c0_i32 = arith.constant 0 : i32
    %c0_i32_0 = arith.constant 0 : i32
    %c0_i32_1 = arith.constant 0 : i32
    return %arg0, %c0_i32, %c0_i32_0 : i32, i32, i32
  }
  func.func @transform_1(%arg0: i32) -> (i32, i32) {
    %c0_i32 = arith.constant 0 : i32
    %c0_i32_0 = arith.constant 0 : i32
    %c0_i32_1 = arith.constant 0 : i32
    return %c0_i32, %c0_i32_0 : i32, i32
  }
  func.func @transform_2(%arg0: i32) -> (i32, i32) {
    %c0_i32 = arith.constant 0 : i32
    %c0_i32_0 = arith.constant 0 : i32
    %c0_i32_1 = arith.constant 0 : i32
    return %c0_i32, %c0_i32_0 : i32, i32
  }
  func.func @transform_3(%arg0: i32) -> (i32, i32) {
    %c0_i32 = arith.constant 0 : i32
    %c0_i32_0 = arith.constant 0 : i32
    %c0_i32_1 = arith.constant 0 : i32
    return %c0_i32, %c0_i32_0 : i32, i32
  }
  func.func @transform_4(%arg0: i32) -> (i32, i32) {
    %c0_i32 = arith.constant 0 : i32
    %c0_i32_0 = arith.constant 0 : i32
    %c0_i32_1 = arith.constant 0 : i32
    return %c0_i32, %c0_i32_0 : i32, i32
  }
  func.func @transform_5(%arg0: i32) -> (i32, i32) {
    %c0_i32 = arith.constant 0 : i32
    %c0_i32_0 = arith.constant 0 : i32
    %c0_i32_1 = arith.constant 0 : i32
    return %c0_i32, %c0_i32_0 : i32, i32
  }
  func.func @transform_6(%arg0: i32) -> (i32, i32) {
    %c0_i32 = arith.constant 0 : i32
    %c0_i32_0 = arith.constant 0 : i32
    %c0_i32_1 = arith.constant 0 : i32
    return %c0_i32, %c0_i32_0 : i32, i32
  }
  func.func @transform_7(%arg0: i32) -> (i32, i32, i32) {
    %c0_i32 = arith.constant 0 : i32
    %c0_i32_0 = arith.constant 0 : i32
    %c0_i32_1 = arith.constant 0 : i32
    return %arg0, %c0_i32, %c0_i32_0 : i32, i32, i32
  }
}

</mosaic_0001>

<bundles_post_ra>
// kernel: tpu_custom_call.1
= control target key start
LH: loop header
LB: loop body
LE: loop exit
PB: predicated region body
PF: predicated region fallthrough
CT: control target
= control target key end

     0   :  { %12 = vsyncpa [#allocation3], 0  ;;  %s1820_s0 = inlined_call_operand.vmem [shape: f32[2,8,32], index: 0, kind: input, shape index: {}]   ;;  %s1821_s1 = inlined_call_operand.vmem [shape: f32[6,32], index: 1, kind: input, shape index: {}]   ;;  %s1822_s2 = inlined_call_operand.vmem [shape: bf16[32,96], index: 2, kind: input, shape index: {}]   ;;  %s1823_s3 = inlined_call_operand.vmem [shape: bf16[32,32], index: 3, kind: input, shape index: {}]   ;;  %s1824_s4 = inlined_call_operand.vmem [shape: bf16[32,128], index: 4, kind: input, shape index: {}]   ;;  %s1825_s5 = inlined_call_operand.vmem [shape: f32[1,128], index: 5, kind: input, shape index: {}]   ;;  %s1826_s6 = inlined_call_operand.vmem [shape: bf16[128,32], index: 6, kind: input, shape index: {}]   ;;  %s1827_s7 = inlined_call_operand.hbm [shape: f32[2,8,32], index: 7, kind: output, shape index: {}]  }
   0x1   :  { %14 = vsyncpa [#allocation3 + $0x1], 0  ;;  %s1551_s24 = smov 0   ;;  %s1553_s25 = smov 0  }
   0x2   :  { %s1555_s26 = smov 0   ;;  %s1557_s27 = smov 0  }
   0x3 LB: > { %s1572_s28 = sadd.s32 4294967295, %s1492_s27   ;;  %s1175_s29 = sadd.s32 4294967294, %s1492_s27   ;;  %s1492_s27 = sphi %s1557_s27, %s1833_s27   ;;  %s1488_s26 = sphi %s1555_s26, %s1832_s26   ;;  %s1484_s25 = sphi %s1553_s25, %s1831_s25   ;;  %s1480_s24 = sphi %s1551_s24, %s1830_s24  }
   0x4   : > { %s1576_s30 = sadd.s32 1, %s1492_s27   ;;  %s179_s8 = sadd.s32 1, %s1488_s26 }
   0x5   : > { %s176_s9 = ssub.s32 %s1492_s27, %s1576_s30  ;;  %p189_p0 = scmp.ne.s32.totalorder %s1488_s26, %s1484_s25 }
   0x6   : > { %p177_p1 = scmp.eq.s32.totalorder %s176_s9, 0  ;;  %p190_p2 = scmp.eq.s32.totalorder %s1572_s28, 1 }
   0x7   : > { %p195_p3 = scmp.ne.s32.totalorder %s1484_s25, %s1480_s24  ;;  %p196_p4 = scmp.eq.s32.totalorder %s1175_s29, 1 }
   0x8   : > { %s1587_s10 = scalar_select %p177_p1, %s1488_s26, %s179_s8  }
   0x9   : > { %p1589_p5 = por %p190_p2, %p189_p0  ;;  %p1593_p6 = por %p196_p4, %p195_p3 }
   0xa   : > { %p1178_p7 = scmp.ge.s32.totalorder %s1492_s27, 1  ;;  %p239_p8 = scmp.lt.s32.totalorder %s1492_s27, 3 }
   0xc   : > { %p240_p9 = pnand %p1178_p7, %p239_p8 }
   0xd   : > { %p270_p10 = scmp.lt.s32.totalorder (!%p240_p9), %s1572_s28, 1  ;;  %s1496_s9 = smov (!%p240_p9), 120  }
   0xe   : > { %243 = sbr.rel (%p240_p9) target bundleno = 2449 (0x991), region = 48  ;;  %s1499_s15 = smov (!%p240_p9), 80  }
   0xf   : > { %s1500_s16 = smov (!%p240_p9), 112   ;;  %s1502_s18 = smov (!%p240_p9), 104  }
  0x10   : > { %s1503_s19 = smov (!%p240_p9), 64   ;;  %s1504_s20 = smov (!%p240_p9), 56  }
  0x11   : > { %s1505_s21 = smov (!%p240_p9), 48   ;;  %s1506_s22 = smov (!%p240_p9), 40  }
  0x12   : > { %s1507_s23 = smov (!%p240_p9), 8  }
  0x13   : > { %s271_s13 = scalar_select %p270_p10, %s1572_s28, 1  ;;  %vm282_vm0 = vcmask 261120   ;;  %v1398_v7 = vld [vmem:[%s1822_s2 + $0x8] sm:$0xff]   ;;  %v1494_v8 = vmov 0.0   ;;  %vm1495_vm1 = vmmov 0   ;;  %v1399_v9 = vld [vmem:[%s1822_s2] sm:$0xff]   ;;  %v368_v36 = vlaneseq }
  0x14   : > { %1251 = vmatprep.subr.bf16.mxu0 %v1494_v8  ;;  %1255 = vmatprep.mubr.msk.bf16.mxu0 %vm1495_vm1, %v1494_v8  ;;  %v1181_v14 = vld [vmem:[%s1821_s1] ss:$0 sm:$0xff]  ;;  %v1182_v16 = vld [vmem:[%s1821_s1 + $0x1] ss:$0 sm:$0xff]  ;;  %vm376_vm2 = vcmask 64512   ;;  %vm441_vm4 = vcmask 1043456  }
  0x15   : > { %s1180_s14 = sshll.u32 %s271_s13, 3  ;;  %1252 = vmatpush3.bf16.msra.mxu0 %v1398_v7  ;;  %1271 = vmatprep.subr.bf16.mxu1 %v1494_v8  ;;  %s1497_s13 = smov 96   ;;  %v369_v37 = vshrl.u32 %v368_v36, 7  ;;  %v371_v38 = vand.u32 127, %v368_v36  ;;  %vm831_vm5 = vcmask 130048   ;;  %vm833_vm6 = vcmask 195584  }
  0x16   : > { %s273_s17 = scalar_lea.vmem %s1820_s0, %s1180_s14  ;;  %1253 = vmatprep.subr.bf16.mxu0 %v1494_v8  ;;  %1273 = vmatprep.mubr.msk.bf16.mxu1 %vm1495_vm1, %v1494_v8  ;;  %s1498_s14 = smov 88  }
  0x17   : > { %v1604_v0 = vld [vmem:[%s273_s17] sm:$0xff]  ;;  %s1501_s17 = smov 72   ;;  %vm372_vm3 = vcmp.le.s32.totalorder %v371_v38, %v369_v37 }
  0x18   : > { %v283_v1 = vsel %vm282_vm0, %v1604_v0, 0.0 }
  0x19   : > { %284 = vadd.xlane.f32.xlu0 %v283_v1  ;;  %1254 = vmatpush3.bf16.msra.mxu0 %v1399_v9 }
  0x1a   : > { %1259 = vmatprep.subr.bf16.mxu0 %v1494_v8 }
  0xa2   : > { %v285_v2 = vpop.xlane.xlu0 %284 }
  0xa3   : > { %v287_v3 = vmul.f32 0.03125, %v285_v2 }
  0xa5   : > { %v288_v4 = vsub.f32 %v1604_v0, %v287_v3 }
  0xa7   : > { %v289_v5 = vmul.f32 %v288_v4, %v288_v4 }
  0xa9   : > { %v290_v6 = vsel %vm282_vm0, %v289_v5, 0.0 }
  0xaa   : > { %291 = vadd.xlane.f32.xlu0 %v290_v6 }
 0x133   : > { %v292_v10 = vpop.xlane.xlu0 %291 }
 0x134   : > { %v293_v11 = vmul.f32 0.03125, %v292_v10 }
 0x136   : > { %v294_v12 = vadd.f32 1e-05, %v293_v11 }
 0x138   : > { %1412 = vrsqrt.f32 %v294_v12 }
 0x145   : > { %v1413_v13 = vpop.eup %1412 }
 0x146   : > { %v296_v15 = vmul.f32 %v1413_v13, %v288_v4 }
 0x148   : > { %v301_v17 = vmul.f32 %v1181_v14, %v296_v15 }
 0x14a   : > { %v306_v18 = vadd.f32 %v1182_v16, %v301_v17 }
 0x14c   : > { %v307_v19 = vpack.c.bf16 %v306_v18, %v306_v18 }
 0x14e   : > { %1256 = vmatmul.mubr.msk.bf16.vlgmr.msra.gmra.mxu0 %vm282_vm0, %v307_v19 }
 0x14f   : > { %1261 = vmatprep.mubr.msk.bf16.mxu0 %vm1495_vm1, %v1494_v8 }
 0x20e   : > { %v361_v20 = vpop.f32.mrf.mxu0 }
 0x20f   : > { %v1633_v21 = vpack.c.bf16 %v361_v20, %v361_v20 }
 0x210   : > { %v1257_v22 = vpop.f32.mrf.mxu0 }
 0x211   : > { %485 = vrot.lane.b32.xlu0 %v1633_v21, %s1496_s9  ;;  %374 = vrot.lane.b32.xlu1 %v1633_v21, %s1497_s13  ;;  %s1510_s13 = smov [#allocation2]  }
 0x212   : > { %v364_v23 = vpop.f32.mrf.mxu0 }
 0x214   : > { %v1258_v24 = vpop.f32.mrf.mxu0 }
 0x215   : > { %487 = vrot.lane.b32.xlu1 %v1633_v21, %s1498_s14  ;;  %s1508_s14 = smov 16  }
 0x219   : > { %598 = vrot.lane.b32.xlu1 %v1633_v21, %s1499_s15  ;;  %s1509_s15 = smov 24  }
 0x21d   : > { %596 = vrot.lane.b32.xlu1 %v1633_v21, %s1500_s16  ;;  %s267_s16 = sand.u32 1, %s1484_s25  }
 0x221   : > { %709 = vrot.lane.b32.xlu1 %v1633_v21, %s1501_s17  ;;  %s1179_s17 = sshll.u32 %s267_s16, 3 }
 0x225   : > { %707 = vrot.lane.b32.xlu1 %v1633_v21, %s1502_s18 }
 0x283   : > { %v375_v25 = vpop.permute.xlu1 %374  ;;  %v486_v30 = vpop.permute.xlu0 %485 }
 0x284   : > { %v381_v26 = vsel %vm376_vm2, %v375_v25, 0 }
 0x285   : > { %1260 = vmatpush3.bf16.xpose.msra.mxu0 %v381_v26 }
 0x286   : > { %1265 = vmatprep.subr.bf16.mxu0 %v1494_v8 }
 0x287   : > { %v488_v27 = vpop.permute.xlu1 %487 }
 0x288   : > { %v493_v28 = vsel %vm376_vm2, %v488_v27, 0 }
 0x289   : > { %1272 = vmatpush3.bf16.xpose.msra.mxu1 %v493_v28 }
 0x28a   : > { %1283 = vmatprep.subr.bf16.mxu1 %v1494_v8 }
 0x28b   : > { %v599_v29 = vpop.permute.xlu1 %598 }
 0x28c   : > { %1262 = vmatmul.mubr.msk.bf16.vlgmr.msra.gmra.mxu0 %vm376_vm2, %v1633_v21  ;;  %v604_v32 = vsel %vm376_vm2, %v599_v29, 0 }
 0x28d   : > { %1267 = vmatprep.mubr.msk.bf16.mxu0 %vm1495_vm1, %v1494_v8 }
 0x28f   : > { %v597_v31 = vpop.permute.xlu1 %596 }
 0x290   : > { %1274 = vmatmul.mubr.msk.bf16.vlgmr.msra.gmra.mxu1 %vm376_vm2, %v486_v30 }
 0x291   : > { %1284 = vmatpush3.bf16.xpose.msra.mxu1 %v604_v32  ;;  %1285 = vmatprep.mubr.msk.bf16.mxu1 %vm1495_vm1, %v1494_v8 }
 0x292   : > { %1295 = vmatprep.subr.bf16.mxu1 %v1494_v8 }
 0x293   : > { %v710_v33 = vpop.permute.xlu1 %709 }
 0x294   : > { %v715_v34 = vsel %vm376_vm2, %v710_v33, 0 }
 0x297   : > { %v708_v35 = vpop.permute.xlu1 %707 }
 0x298   : > { %1286 = vmatmul.mubr.msk.bf16.vlgmr.msra.gmra.mxu1 %vm376_vm2, %v597_v31 }
 0x299   : > { %1296 = vmatpush3.bf16.xpose.msra.mxu1 %v715_v34  ;;  %1297 = vmatprep.mubr.msk.bf16.mxu1 %vm1495_vm1, %v1494_v8 }
 0x29a   : > { %1307 = vmatprep.subr.bf16.mxu1 %v1494_v8 }
 0x2a0   : > { %1298 = vmatmul.mubr.msk.bf16.vlgmr.msra.gmra.mxu1 %vm376_vm2, %v708_v35 }
 0x2a1   : > { %1311 = vmatprep.mubr.msk.bf16.mxu1 %vm1495_vm1, %v1494_v8 }
 0x34c   : > { %v417_v39 = vpop.f32.mrf.mxu0 }
 0x34d   : > { %v423_v40 = vsel %vm372_vm3, %v417_v39, -inf }
 0x34e   : > { %v1263_v41 = vpop.f32.mrf.mxu0  ;;  %v424_v42 = vsel %vm376_vm2, %v423_v40, -inf }
 0x34f   : > { %425 = vmax.xlane.f32.xlu1 %v424_v42 }
 0x350   : > { %v420_v43 = vpop.f32.mrf.mxu0  ;;  %v529_v44 = vpop.f32.mrf.mxu1 }
 0x351   : > { %v535_v45 = vsel %vm372_vm3, %v529_v44, -inf }
 0x352   : > { %v1264_v46 = vpop.f32.mrf.mxu0  ;;  %v1275_v47 = vpop.f32.mrf.mxu1  ;;  %v536_v48 = vsel %vm376_vm2, %v535_v45, -inf }
 0x353   : > { %537 = vmax.xlane.f32.xlu0 %v536_v48 }
 0x354   : > { %v532_v49 = vpop.f32.mrf.mxu1 }
 0x356   : > { %v1276_v50 = vpop.f32.mrf.mxu1 }
 0x358   : > { %v640_v51 = vpop.f32.mrf.mxu1 }
 0x359   : > { %v646_v52 = vsel %vm372_vm3, %v640_v51, -inf }
 0x35a   : > { %v1287_v53 = vpop.f32.mrf.mxu1  ;;  %v647_v54 = vsel %vm376_vm2, %v646_v52, -inf }
 0x35b   : > { %648 = vmax.xlane.f32.xlu1 %v647_v54  ;;  %v1400_v53 = vld [vmem:[%s1823_s3 + $0x8] sm:$0xff]   ;;  %v1401_v54 = vld [vmem:[%s1823_s3] sm:$0xff]  }
 0x35c   : > { %v643_v55 = vpop.f32.mrf.mxu1  ;;  %1308 = vmatpush3.bf16.msra.mxu1 %v1400_v53 }
 0x35d   : > { %1309 = vmatprep.subr.bf16.mxu1 %v1494_v8 }
 0x35e   : > { %v1288_v56 = vpop.f32.mrf.mxu1 }
 0x360   : > { %v751_v57 = vpop.f32.mrf.mxu1  ;;  %1310 = vmatpush3.bf16.msra.mxu1 %v1401_v54 }
 0x361   : > { %v757_v58 = vsel %vm372_vm3, %v751_v57, -inf  ;;  %1323 = vmatprep.subr.bf16.mxu1 %v1494_v8 }
 0x362   : > { %v1299_v59 = vpop.f32.mrf.mxu1  ;;  %v758_v60 = vsel %vm376_vm2, %v757_v58, -inf }
 0x363   : > { %759 = vmax.xlane.f32.xlu0 %v758_v60 }
 0x364   : > { %v754_v61 = vpop.f32.mrf.mxu1 }
 0x366   : > { %v1300_v62 = vpop.f32.mrf.mxu1 }
 0x3d8   : > { %v426_v63 = vpop.xlane.xlu1 %425 }
 0x3d9   : > { %v427_v1 = vsub.f32 %v423_v40, %v426_v63 }
 0x3db   : > { %v428_v2 = vmul.f32 1.442695, %v427_v1 }
 0x3dc   : > { %v538_v3 = vpop.xlane.xlu0 %537 }
 0x3dd   : > { %1414 = vpow2.f32 %v428_v2  ;;  %v539_v4 = vsub.f32 %v535_v45, %v538_v3 }
 0x3df   : > { %v540_v5 = vmul.f32 1.442695, %v539_v4 }
 0x3e1   : > { %1416 = vpow2.f32 %v540_v5 }
 0x3e4   : > { %v649_v16 = vpop.xlane.xlu1 %648 }
 0x3e5   : > { %v650_v17 = vsub.f32 %v646_v52, %v649_v16 }
 0x3e7   : > { %v651_v18 = vmul.f32 1.442695, %v650_v17 }
 0x3ea   : > { %v1415_v6 = vpop.eup %1414 }
 0x3eb   : > { %v430_v7 = vsel %vm376_vm2, %v1415_v6, 0.0 }
 0x3ec   : > { %v760_v9 = vpop.xlane.xlu0 %759  ;;  %431 = vadd.xlane.f32.xlu1 %v430_v7  ;;  %v1194_v7 = vld [vmem:[%s1821_s1 + $0x2] ss:$0 sm:$0xff] }
 0x3ed   : > { %v761_v10 = vsub.f32 %v757_v58, %v760_v9 }
 0x3ee   : > { %v1417_v11 = vpop.eup %1416 }
 0x3ef   : > { %v762_v12 = vmul.f32 1.442695, %v761_v10  ;;  %v542_v13 = vsel %vm376_vm2, %v1417_v11, 0.0 }
 0x3f0   : > { %543 = vadd.xlane.f32.xlu0 %v542_v13 }
 0x3f1   : > { %1418 = vpow2.f32 %v762_v12 }
 0x3f2   : > { %1420 = vpow2.f32 %v651_v18 }
 0x3fd   : > { %436 = vrot.lane.b32.xlu1 %v1633_v21, %s1503_s19 }
 0x3fe   : > { %v1419_v14 = vpop.eup %1418 }
 0x3ff   : > { %v764_v15 = vsel %vm376_vm2, %v1419_v14, 0.0  ;;  %v1421_v19 = vpop.eup %1420 }
 0x400   : > { %765 = vadd.xlane.f32.xlu0 %v764_v15  ;;  %v653_v20 = vsel %vm376_vm2, %v1421_v19, 0.0 }
 0x416   : > { %548 = vrot.lane.b32.xlu0 %v1633_v21, %s1504_s20  ;;  %s1214_s20 = sshll.u32 %s1572_s28, 7  ;;  %s1103_s28 = scalar_lea.sflag [#allocation3], %s267_s16 }
 0x417   : > { %s1778_s8 = scalar_lea.hbm %s1827_s7, %s1214_s20 }
 0x421   : > { %654 = vadd.xlane.f32.xlu1 %v653_v20 }
 0x432   : > { %659 = vrot.lane.b32.xlu1 %v1633_v21, %s1505_s21  ;;  %s269_s21 = scalar_lea.vmem [#allocation2], %s1179_s17 }
 0x436   : > { %770 = vrot.lane.b32.xlu1 %v1633_v21, %s1506_s22  ;;  %s1116_s22 = sshll.u32 %s269_s21, 4  ;;  %s1780_s22 = int_to_ptr.vmem [resolvable:$true] %s1116_s22 }
 0x437   : > { %s1432_s9 = scalar_lea.vmem %s1780_s22, 128 }
 0x438   : > { %p1433_p11 = scmp.ne.s32.totalorder %s1780_s22, %s1432_s9 }
 0x43a   : > { %p1434_p12 = pnand %p1433_p11, %p1589_p5 }
 0x43c   : > { %p1435_p13 = pneg %p1434_p12 }
 0x475   : > { %v432_v22 = vpop.xlane.xlu1 %431 }
 0x476   : > { %1422 = vrcp.f32 %v432_v22  ;;  %v1402_v22 = vld [vmem:[%s1824_s4 + $0x8] sm:$0xff]  }
 0x479   : > { %v544_v23 = vpop.xlane.xlu0 %543  ;;  %v437_v24 = vpop.permute.xlu1 %436 }
 0x47a   : > { %v443_v25 = vsel %vm441_vm4, %v437_v24, 0  ;;  %1424 = vrcp.f32 %v544_v23  ;;  %v1404_v23 = vld [vmem:[%s1826_s6 + $0x38] sm:$0xff]   ;;  %v1405_v24 = vld [vmem:[%s1826_s6 + $0x30] sm:$0xff]  }
 0x47b   : > { %1266 = vmatpush3.bf16.msra.mxu0 %v443_v25  ;;  %v1406_v25 = vld [vmem:[%s1826_s6 + $0x28] sm:$0xff]  }
 0x47c   : > { %1277 = vmatprep.subr.bf16.mxu0 %v1494_v8 }
 0x483   : > { %v1423_v26 = vpop.eup %1422 }
 0x484   : > { %v434_v27 = vmul.f32 %v1423_v26, %v1415_v6  ;;  %v1407_v26 = vld [vmem:[%s1826_s6 + $0x20] sm:$0xff]  }
 0x486   : > { %v435_v28 = vpack.c.bf16 %v434_v27, %v434_v27  ;;  %v1408_v27 = vld [vmem:[%s1826_s6 + $0x18] sm:$0xff]  }
 0x487   : > { %v1425_v29 = vpop.eup %1424 }
 0x488   : > { %1268 = vmatmul.mubr.msk.bf16.vlgmr.msra.gmra.mxu0 %vm376_vm2, %v435_v28  ;;  %v546_v21 = vmul.f32 %v1425_v29, %v1417_v11  ;;  %v1409_v28 = vld [vmem:[%s1826_s6 + $0x10] sm:$0xff]  }
 0x489   : > { %v766_v30 = vpop.xlane.xlu0 %765  ;;  %1279 = vmatprep.mubr.msk.bf16.mxu0 %vm1495_vm1, %v1494_v8 }
 0x48a   : > { %v547_v33 = vpack.c.bf16 %v546_v21, %v546_v21 }
 0x48d   : > { %v549_v31 = vpop.permute.xlu0 %548 }
 0x48e   : > { %v554_v32 = vsel %vm441_vm4, %v549_v31, 0 }
 0x48f   : > { %1278 = vmatpush3.bf16.msra.mxu0 %v554_v32  ;;  %v1198_v32 = vld [vmem:[%s1821_s1 + $0x3] ss:$0 sm:$0xff] }
 0x490   : > { %1289 = vmatprep.subr.bf16.mxu0 %v1494_v8 }
 0x492   : > { %1280 = vmatmul.mubr.msk.bf16.vlgmr.msra.gmra.mxu0 %vm376_vm2, %v547_v33 }
 0x493   : > { %1291 = vmatprep.mubr.msk.bf16.mxu0 %vm1495_vm1, %v1494_v8 }
 0x4aa   : > { %v655_v34 = vpop.xlane.xlu1 %654 }
 0x4ab   : > { %1426 = vrcp.f32 %v655_v34  ;;  %v1199_v34 = vld [vmem:[%s1821_s1 + $0x4] ss:$0 sm:$0xff] }
 0x4ac   : > { %1428 = vrcp.f32 %v766_v30 }
 0x4ae   : > { %v660_v35 = vpop.permute.xlu1 %659 }
 0x4af   : > { %v665_v36 = vsel %vm441_vm4, %v660_v35, 0 }
 0x4b0   : > { %1290 = vmatpush3.bf16.msra.mxu0 %v665_v36 }
 0x4b1   : > { %1301 = vmatprep.subr.bf16.mxu0 %v1494_v8 }
 0x4b2   : > { %v771_v39 = vpop.permute.xlu1 %770 }
 0x4b3   : > { %v776_v42 = vsel %vm441_vm4, %v771_v39, 0  ;;  %v1411_v39 = vld [vmem:[%s1826_s6] sm:$0xff]  }
 0x4b8   : > { %v1427_v37 = vpop.eup %1426 }
 0x4b9   : > { %v657_v38 = vmul.f32 %v1427_v37, %v1421_v19  ;;  %v1429_v41 = vpop.eup %1428 }
 0x4ba   : > { %v768_v43 = vmul.f32 %v1429_v41, %v1419_v14 }
 0x4bb   : > { %v658_v40 = vpack.c.bf16 %v657_v38, %v657_v38  ;;  %v1410_v38 = vld [vmem:[%s1826_s6 + $0x8] sm:$0xff]  }
 0x4bc   : > { %v769_v44 = vpack.c.bf16 %v768_v43, %v768_v43 }
 0x4bd   : > { %1292 = vmatmul.mubr.msk.bf16.vlgmr.msra.gmra.mxu0 %vm376_vm2, %v658_v40  ;;  %v1200_v40 = vld [vmem:[%s1825_s5] ss:$0 sm:$0xff] }
 0x4be   : > { %1302 = vmatpush3.bf16.msra.mxu0 %v776_v42  ;;  %1303 = vmatprep.mubr.msk.bf16.mxu0 %vm1495_vm1, %v1494_v8 }
 0x4bf   : > { %1315 = vmatprep.subr.bf16.mxu0 %v1494_v8 }
 0x4c5   : > { %1304 = vmatmul.mubr.msk.bf16.vlgmr.msra.gmra.mxu0 %vm376_vm2, %v769_v44 }
 0x4c6   : > { %1319 = vmatprep.mubr.msk.bf16.mxu0 %vm1495_vm1, %v1494_v8  ;;  %1316 = vmatpush3.bf16.msra.mxu0 %v1402_v22 }
 0x4c7   : > { %1317 = vmatprep.subr.bf16.mxu0 %v1494_v8 }
 0x548   : > { %v479_v45 = vpop.f32.mrf.mxu0 }
 0x54a   : > { %v1269_v46 = vpop.f32.mrf.mxu0 }
 0x54c   : > { %v482_v47 = vpop.f32.mrf.mxu0 }
 0x54e   : > { %v1270_v48 = vpop.f32.mrf.mxu0 }
 0x552   : > { %v590_v49 = vpop.f32.mrf.mxu0 }
 0x553   : > { %819 = vrot.lane.b32.xlu0 %v590_v49, %s1507_s23 }
 0x554   : > { %v1281_v50 = vpop.f32.mrf.mxu0 }
 0x556   : > { %v593_v51 = vpop.f32.mrf.mxu0 }
 0x558   : > { %v1282_v52 = vpop.f32.mrf.mxu0 }
 0x57d   : > { %v701_v55 = vpop.f32.mrf.mxu0 }
 0x57e   : > { %823 = vrot.lane.b32.xlu1 %v701_v55, %s1508_s14  ;;  %s1436_s14 = sshll.u32 %s1510_s13, 4  ;;  %s1437_s14 = int_to_ptr.vmem [resolvable:$false] %s1436_s14 }
 0x57f   : > { %v1293_v56 = vpop.f32.mrf.mxu0  ;;  %p1439_p0 = scmp.lt.s32.totalorder %s1780_s22, %s1437_s14 }
 0x581   : > { %v704_v57 = vpop.f32.mrf.mxu0 }
 0x583   : > { %v1294_v58 = vpop.f32.mrf.mxu0 }
 0x585   : > { %v812_v59 = vpop.f32.mrf.mxu0 }
 0x586   : > { %827 = vrot.lane.b32.xlu0 %v812_v59, %s1509_s15  ;;  %s1438_s15 = scalar_lea.vmem %s1437_s14, 256 }
 0x587   : > { %v1305_v60 = vpop.f32.mrf.mxu0  ;;  %p1440_p1 = scmp.lt.s32.totalorder %s1438_s15, %s1432_s9 }
 0x589   : > { %v815_v61 = vpop.f32.mrf.mxu0  ;;  %p1441_p2 = por %p1440_p1, %p1439_p0 }
 0x58b   : > { %v1306_v62 = vpop.f32.mrf.mxu0  ;;  %p1442_p3 = pnand %p1441_p2, %p1435_p13 }
 0x5c5   : > { %v820_v63 = vpop.permute.xlu0 %819 }
 0x5c6   : > { %v830_v2 = vsel %vm376_vm2, %v479_v45, %v820_v63 }
 0x5f0   : > { %v824_v1 = vpop.permute.xlu1 %823 }
 0x5f1   : > { %v832_v3 = vsel %vm831_vm5, %v830_v2, %v824_v1 }
 0x5f8   : > { %v828_v4 = vpop.permute.xlu0 %827 }
 0x5f9   : > { %v834_v5 = vsel %vm833_vm6, %v832_v3, %v828_v4 }
 0x5fa   : > { %v835_v6 = vpack.c.bf16 %v834_v5, %v834_v5 }
 0x5fc   : > { %1312 = vmatmul.mubr.msk.bf16.vlgmr.msra.gmra.mxu1 %vm282_vm0, %v835_v6 }
 0x5fd   : > { %1339 = vmatprep.mubr.msk.bf16.mxu1 %vm1495_vm1, %v1494_v8  ;;  %1324 = vmatpush3.bf16.msra.mxu1 %v1404_v23 }
 0x5fe   : > { %1325 = vmatprep.subr.bf16.mxu1 %v1494_v8 }
 0x601   : > { %1326 = vmatpush3.bf16.msra.mxu1 %v1405_v24 }
 0x602   : > { %1327 = vmatprep.subr.bf16.mxu1 %v1494_v8 }
 0x605   : > { %1328 = vmatpush3.bf16.msra.mxu1 %v1406_v25 }
 0x606   : > { %1329 = vmatprep.subr.bf16.mxu1 %v1494_v8 }
 0x609   : > { %1330 = vmatpush3.bf16.msra.mxu1 %v1407_v26 }
 0x60a   : > { %1331 = vmatprep.subr.bf16.mxu1 %v1494_v8 }
 0x60d   : > { %1332 = vmatpush3.bf16.msra.mxu1 %v1408_v27 }
 0x60e   : > { %1333 = vmatprep.subr.bf16.mxu1 %v1494_v8 }
 0x611   : > { %1334 = vmatpush3.bf16.msra.mxu1 %v1409_v28 }
 0x612   : > { %1335 = vmatprep.subr.bf16.mxu1 %v1494_v8 }
 0x615   : > { %1336 = vmatpush3.bf16.msra.mxu1 %v1410_v38 }
 0x616   : > { %1337 = vmatprep.subr.bf16.mxu1 %v1494_v8  ;;  %v1204_v8 = vld [vmem:[%s1821_s1 + $0x5] ss:$0 sm:$0xff] }
 0x619   : > { %1338 = vmatpush3.bf16.msra.mxu1 %v1411_v39 }
 0x6bc   : > { %v893_v9 = vpop.f32.mrf.mxu1 }
 0x6bd   : > { %v894_v10 = vadd.f32 %v1194_v7, %v893_v9 }
 0x6be   : > { %v1313_v11 = vpop.f32.mrf.mxu1 }
 0x6bf   : > { %v1715_v12 = vadd.f32 %v894_v10, %v1604_v0  ;;  %v1403_v0 = vld [vmem:[%s1824_s4] sm:$0xff]  }
 0x6c0   : > { %v896_v13 = vpop.f32.mrf.mxu1  ;;  %1318 = vmatpush3.bf16.msra.mxu0 %v1403_v0 }
 0x6c1   : > { %v900_v14 = vsel %vm282_vm0, %v1715_v12, 0.0 }
 0x6c2   : > { %901 = vadd.xlane.f32.xlu1 %v900_v14  ;;  %v1314_v15 = vpop.f32.mrf.mxu1 }
 0x74b   : > { %v902_v16 = vpop.xlane.xlu1 %901 }
 0x74c   : > { %v903_v17 = vmul.f32 0.03125, %v902_v16 }
 0x74e   : > { %v904_v18 = vsub.f32 %v1715_v12, %v903_v17 }
 0x750   : > { %v905_v19 = vmul.f32 %v904_v18, %v904_v18 }
 0x752   : > { %v906_v20 = vsel %vm282_vm0, %v905_v19, 0.0 }
 0x753   : > { %907 = vadd.xlane.f32.xlu0 %v906_v20 }
 0x7dc   : > { %v908_v29 = vpop.xlane.xlu0 %907 }
 0x7dd   : > { %v909_v30 = vmul.f32 0.03125, %v908_v29 }
 0x7df   : > { %v910_v21 = vadd.f32 1e-05, %v909_v30 }
 0x7e1   : > { %1430 = vrsqrt.f32 %v910_v21 }
 0x7ee   : > { %v1431_v31 = vpop.eup %1430 }
 0x7ef   : > { %v912_v33 = vmul.f32 %v1431_v31, %v904_v18 }
 0x7f1   : > { %v917_v35 = vmul.f32 %v1198_v32, %v912_v33 }
 0x7f3   : > { %v922_v36 = vadd.f32 %v1199_v34, %v917_v35 }
 0x7f5   : > { %v923_v37 = vpack.c.bf16 %v922_v36, %v922_v36 }
 0x7f7   : > { %1320 = vmatmul.mubr.msk.bf16.vlgmr.msra.gmra.mxu0 %vm282_vm0, %v923_v37 }
 0x8b7   : > { %v984_v41 = vpop.f32.mrf.mxu0 }
 0x8b8   : > { %v985_v42 = vadd.f32 %v1200_v40, %v984_v41 }
 0x8b9   : > { %v1321_v43 = vpop.f32.mrf.mxu0 }
 0x8ba   : > { %v990_v44 = vmax.f32 %v985_v42, 0.0 }
 0x8bb   : > { %v987_v45 = vpop.f32.mrf.mxu0 }
 0x8bc   : > { %v991_v46 = vpack.c.bf16 %v990_v44, %v990_v44 }
 0x8bd   : > { %v1322_v47 = vpop.f32.mrf.mxu0 }
 0x8be   : > { %1340 = vmatmul.mubr.bf16.vlgmr.msra.gmra.mxu1 %v991_v46 }
 0x97e   : > { %v1094_v48 = vpop.f32.mrf.mxu1 }
 0x97f   : > { %v1095_v49 = vadd.f32 %v1204_v8, %v1094_v48 }
 0x980   : > { %v1341_v50 = vpop.f32.mrf.mxu1 }
 0x981   : > { %v1100_v51 = vadd.f32 %v1095_v49, %v1715_v12 }
 0x982   : > { %v1097_v52 = vpop.f32.mrf.mxu1 }
 0x983   : > { %1101 = vst.msk [vmem:[%s269_s21] sm:$0xff] %vm282_vm0, %v1100_v51 }
 0x984   : > { %v1342_v53 = vpop.f32.mrf.mxu1 }
 0x985   : > { %1445 = shalt.err (!%p1442_p3)
}
 0x986   : > { %s1446_s17 = scalar_lea.hbm %s1778_s8, 128  ;;  %s1450_s19 = scalar_lea.hbm %s1827_s7, 256 }
 0x987   : > { %p1447_p4 = scmp.ne.s32.totalorder %s1778_s8, %s1446_s17  ;;  %p1451_p9 = scmp.lt.s32.totalorder %s1778_s8, %s1827_s7 }
 0x988   : > { %p1452_p10 = scmp.lt.s32.totalorder %s1450_s19, %s1446_s17 }
 0x989   : > { %p1448_p7 = pnand %p1447_p4, %p1589_p5 }
 0x98a   : > { %p1453_p11 = por %p1452_p10, %p1451_p9 }
 0x98b   : > { %p1449_p8 = pneg %p1448_p7 }
 0x98d   : > { %p1454_p12 = pnand %p1453_p11, %p1449_p8 }
 0x98f   : > { %1457 = shalt.err (!%p1454_p12)
}
 0x990   : > { %1343 = dma.vmem_to_hbm [thread:$0]  (%p1589_p5), %s1780_s22, 128, %s1778_s8, %s1103_s28  }
 0x991 PF: > { %p1349_p13 = scmp.ge.s32.totalorder %s1492_s27, 2  ;;  %s1128_s23 = sand.u32 1, %s1480_s24  }
 0x992   : > { %s1129_s29 = scalar_lea.sflag [#allocation3], %s1128_s23 }
 0x993   : > { %p1346_p0 = pnand %p1349_p13, %p1593_p6 }
 0x995   : > { %p1347_p1 = pneg %p1346_p0 }
 0x997   : > { %1475 = dma.done.wait (%p1347_p1), %s1129_s29, 128  }
 0x998   : > { %1477 = vsyncadd (%p1347_p1), %s1129_s29, 4294967168  ;;  %p17_p2 = scmp.ge.s32.totalorder %s1576_s30, 4   ;;  %s1830_s24 = smov %s1484_s25 }
 0x999   : > { %s1831_s25 = smov %s1488_s26  ;;  %s1832_s26 = smov %s1587_s10 }
 0x99a   : > { %s1833_s27 = smov %s1576_s30  ;;  %19 = sbr.rel (!%p17_p2) target bundleno = 3 (0x3), region = 83 }
 0x99f   :  { %1134 = vsyncpa [#allocation3], 1 }
 0x9a0   :  { %1136 = vsyncpa [#allocation3 + $0x1], 1 }

</bundles_post_ra>
